<compile_context>
chip_gen: v5e
topology: v5e:2x2
jax: 0.10.0
libtpu: 0.0.40
codegen_flags: <defaults>
</compile_context>

<pallas_src>
import functools

import jax
import jax.numpy as jnp
from jax.experimental import pallas as pl
from jax.experimental.pallas import tpu as pltpu


# --------------------------------------------------------------------------- #
# Fused single-pass kernel: pool + excite + scale, one HBM read of x per batch #
# --------------------------------------------------------------------------- #
def _fused_kernel(x_ref, w1t_ref, w2_ref, o_ref, *, inv_hw):
    # x_ref/o_ref: (C, HW)   w1t_ref: (C, Cr)   w2_ref: (C, Cr)
    x = x_ref[...]
    # squeeze: per-channel mean over the lane (HW) axis, f32 accumulation.
    pooled = jnp.sum(x, axis=-1, keepdims=True, dtype=jnp.float32) * inv_hw   # (C, 1)
    # excitation (tiny: VPU broadcast-multiplies + XLU reductions, no MXU)
    h = jnp.sum(pooled * w1t_ref[...].astype(jnp.float32),
                axis=0, keepdims=True)                                        # (1, Cr)
    h = jnp.where(h > 0, h, 0.01 * h)                                         # LeakyReLU
    s = jnp.sum(w2_ref[...].astype(jnp.float32) * h,
                axis=1, keepdims=True)                                        # (C, 1)
    gate = jax.nn.sigmoid(s)
    # scale: broadcast (C,1) gate over HW lanes; keep the multiply in x dtype.
    o_ref[...] = x * gate.astype(o_ref.dtype)


# --------------------------------------------------------------------------- #
# Streaming fallback: pass 1 (pool + excite -> gate), pass 2 (scale)           #
# --------------------------------------------------------------------------- #
def _pool_gate_kernel(x_ref, w1t_ref, w2_ref, gate_ref, acc_ref, *, inv_hw):
    # x_ref: (C, thw)   w1t_ref/w2_ref: (C, Cr)
    # gate_ref: (C, 1) f32 output   acc_ref: (C, 1) f32 scratch
    t = pl.program_id(1)

    @pl.when(t == 0)
    def _init():
        acc_ref[...] = jnp.zeros_like(acc_ref)

    acc_ref[...] += jnp.sum(x_ref[...], axis=-1, keepdims=True, dtype=jnp.float32)

    @pl.when(t == pl.num_programs(1) - 1)
    def _finalize():
        pooled = acc_ref[...] * inv_hw                                        # (C, 1)
        h = jnp.sum(pooled * w1t_ref[...].astype(jnp.float32),
                    axis=0, keepdims=True)                                    # (1, Cr)
        h = jnp.where(h > 0, h, 0.01 * h)                                     # LeakyReLU
        s = jnp.sum(w2_ref[...].astype(jnp.float32) * h,
                    axis=1, keepdims=True)                                    # (C, 1)
        gate_ref[...] = jax.nn.sigmoid(s).astype(gate_ref.dtype)


def _scale_kernel(x_ref, gate_ref, o_ref):
    # x_ref/o_ref: (C, thw)   gate_ref: (C, 1)
    o_ref[...] = x_ref[...] * gate_ref[...].astype(o_ref.dtype)


def _pick_hw_tile(HW, C, itemsize, max_block_bytes):
    """Largest multiple-of-128 HW tile that divides HW and keeps a (C, thw) block
    under max_block_bytes.  Falls back to the full extent when HW % 128 != 0
    (the last block dim must be 128-aligned or equal to the full array dim)."""
    if HW % 128 != 0:
        return HW
    max_lanes = max(128, (max_block_bytes // max(1, C * itemsize)) // 128 * 128)
    thw = min(HW, max_lanes)
    while HW % thw != 0:
        thw -= 128
    return thw


def se_layer(x_nchw, w1, w2, *,
             fuse_block_bytes=4 * 1024 * 1024,
             max_block_bytes=512 * 1024):
    """SELayer forward.

    x_nchw: (B, C, H, W).  w1: (C//r, C), w2: (C, C//r) (PyTorch Linear, bias=False).
    """
    B, C, H, W = x_nchw.shape
    HW = H * W
    x = x_nchw.reshape(B, C, HW)          # trailing-dim collapse: no data movement
    w1t = jnp.transpose(w1)               # (C, Cr) -- tiny
    Cr = w1t.shape[1]

    vmem_limit = 32 * 1024 * 1024         # well under v5e/v6e/v7x physical VMEM
    slab_bytes = C * HW * x.dtype.itemsize
    inv_hw = 1.0 / HW

    # ---- fused single-pass path: one HBM read + one write of x ---------------
    if slab_bytes <= fuse_block_bytes:
        out = pl.pallas_call(
            functools.partial(_fused_kernel, inv_hw=inv_hw),
            out_shape=jax.ShapeDtypeStruct((B, C, HW), x.dtype),
            grid_spec=pltpu.PrefetchScalarGridSpec(
                num_scalar_prefetch=0,
                grid=(B,),
                in_specs=[
                    pl.BlockSpec((pl.Squeezed(), C, HW), lambda b: (b, 0, 0)),
                    pl.BlockSpec((C, Cr), lambda b: (0, 0)),
                    pl.BlockSpec((C, Cr), lambda b: (0, 0)),
                ],
                out_specs=pl.BlockSpec((pl.Squeezed(), C, HW), lambda b: (b, 0, 0)),
            ),
            compiler_params=pltpu.CompilerParams(
                dimension_semantics=("parallel",),
                vmem_limit_bytes=vmem_limit),
        )(x, w1t, w2)
        return out.reshape(B, C, H, W)

    # ---- streaming fallback: two passes tiled along HW -----------------------
    thw = _pick_hw_tile(HW, C, x.dtype.itemsize, max_block_bytes)
    n_hw = HW // thw

    # pass 1: squeeze + excitation -> per-channel gate, (B, C, 1) f32
    gate = pl.pallas_call(
        functools.partial(_pool_gate_kernel, inv_hw=inv_hw),
        out_shape=jax.ShapeDtypeStruct((B, C, 1), jnp.float32),
        grid_spec=pltpu.PrefetchScalarGridSpec(
            num_scalar_prefetch=0,
            grid=(B, n_hw),
            in_specs=[
                pl.BlockSpec((pl.Squeezed(), C, thw), lambda b, t: (b, 0, t)),
                pl.BlockSpec((C, Cr), lambda b, t: (0, 0)),
                pl.BlockSpec((C, Cr), lambda b, t: (0, 0)),
            ],
            out_specs=pl.BlockSpec((pl.Squeezed(), C, 1), lambda b, t: (b, 0, 0)),
            scratch_shapes=[pltpu.VMEM((C, 1), jnp.float32)],
        ),
        compiler_params=pltpu.CompilerParams(
            dimension_semantics=("parallel", "arbitrary"),
            vmem_limit_bytes=vmem_limit),
    )(x, w1t, w2)

    # pass 2: stream x again, apply the per-channel gate
    out = pl.pallas_call(
        _scale_kernel,
        out_shape=jax.ShapeDtypeStruct((B, C, HW), x.dtype),
        grid_spec=pltpu.PrefetchScalarGridSpec(
            num_scalar_prefetch=0,
            grid=(B, n_hw),
            in_specs=[
                pl.BlockSpec((pl.Squeezed(), C, thw), lambda b, t: (b, 0, t)),
                pl.BlockSpec((pl.Squeezed(), C, 1), lambda b, t: (b, 0, 0)),
            ],
            out_specs=pl.BlockSpec((pl.Squeezed(), C, thw), lambda b, t: (b, 0, t)),
        ),
        compiler_params=pltpu.CompilerParams(
            dimension_semantics=("parallel", "parallel"),
            vmem_limit_bytes=vmem_limit),
    )(x, gate)

    return out.reshape(B, C, H, W)


def _reference(x, w1, w2):
    # pure-JAX reference of the PyTorch forward
    y = jnp.mean(x.astype(jnp.float32), axis=(2, 3))      # (B, C)
    h = y @ w1.T.astype(jnp.float32)
    h = jnp.where(h > 0, h, 0.01 * h)
    s = jax.nn.sigmoid(h @ w2.T.astype(jnp.float32))      # (B, C)
    return (x * s[:, :, None, None]).astype(x.dtype)


if __name__ == "__main__":
    B, C, H, W = 2, 32, 16, 16
    reduction = 16
    Cr = C // reduction

    key = jax.random.PRNGKey(0)
    kx, k1, k2 = jax.random.split(key, 3)
    x = jax.random.normal(kx, (B, C, H, W), dtype=jnp.float32)
    # deterministic "Linear(bias=False)" weights, PyTorch (out, in) convention
    w1 = jax.random.normal(k1, (Cr, C), dtype=jnp.float32) * (1.0 / jnp.sqrt(C))
    w2 = jax.random.normal(k2, (C, Cr), dtype=jnp.float32) * (1.0 / jnp.sqrt(Cr))

    # fused single-pass path (default for these shapes)
    out = jax.block_until_ready(se_layer(x, w1, w2))
    ref = _reference(x, w1, w2)
    assert out.shape == (B, C, H, W)
    assert jnp.allclose(out, ref, atol=1e-5, rtol=1e-5)

    # non-128-multiple spatial extent on the fused path (full-extent block)
    x3 = jax.random.normal(k1, (2, C, 7, 7), dtype=jnp.float32)     # HW = 49
    out3 = jax.block_until_ready(se_layer(x3, w1, w2))
    assert jnp.allclose(out3, _reference(x3, w1, w2), atol=1e-5, rtol=1e-5)

    # force the two-pass streaming fallback (multi-tile reduction path)
    x2 = jax.random.normal(kx, (1, C, 32, 32), dtype=jnp.float32)   # HW = 1024
    out2 = jax.block_until_ready(
        se_layer(x2, w1, w2, fuse_block_bytes=0, max_block_bytes=64 * 1024))
    assert jnp.allclose(out2, _reference(x2, w1, w2), atol=1e-5, rtol=1e-5)

    # streaming fallback with a non-128-multiple spatial extent (single full tile)
    out4 = jax.block_until_ready(se_layer(x3, w1, w2, fuse_block_bytes=0))
    assert jnp.allclose(out4, _reference(x3, w1, w2), atol=1e-5, rtol=1e-5)

    print("KERNEL_OK")
</pallas_src>

<mosaic_0001>
module attributes {stable_mosaic.version = 11 : i64} {
  func.func @_fused_kernel(%arg0: i32, %arg1: memref<1x32x256xf32, #tpu.memory_space<vmem>>, %arg2: memref<32x2xf32, #tpu.memory_space<vmem>>, %arg3: memref<32x2xf32, #tpu.memory_space<vmem>>, %arg4: memref<1x32x256xf32, #tpu.memory_space<vmem>>) attributes {dimension_semantics = [#tpu.dimension_semantics<parallel>], iteration_bounds = array<i64: 2>, scalar_prefetch = 0 : i64, scratch_operands = 0 : i64, tpu.core_type = #tpu.core_type<tc>, window_params = [{transform_indices = @transform_0, window_bounds = array<i64: 1, 32, 256>}, {pipeline_mode = #tpu.pipeline_mode<synchronous>, transform_indices = @transform_1, window_bounds = array<i64: 32, 2>}, {pipeline_mode = #tpu.pipeline_mode<synchronous>, transform_indices = @transform_2, window_bounds = array<i64: 32, 2>}, {transform_indices = @transform_3, window_bounds = array<i64: 1, 32, 256>}]} {
    %c0 = arith.constant 0 : index
    %c0_0 = arith.constant 0 : index
    %c0_1 = arith.constant 0 : index
    %0 = vector.load %arg1[%c0, %c0_0, %c0_1] : memref<1x32x256xf32, #tpu.memory_space<vmem>>, vector<1x32x256xf32>
    %1 = vector.shape_cast %0 : vector<1x32x256xf32> to vector<32x256xf32>
    %cst = arith.constant dense<0.000000e+00> : vector<32xf32>
    %2 = vector.multi_reduction <add>, %1, %cst [1] : vector<32x256xf32> to vector<32xf32>
    %3 = vector.shape_cast %2 : vector<32xf32> to vector<32x1xf32>
    %cst_2 = arith.constant 3.906250e-03 : f32
    %4 = vector.broadcast %cst_2 : f32 to vector<32x1xf32>
    %5 = arith.mulf %3, %4 : vector<32x1xf32>
    %c0_3 = arith.constant 0 : index
    %c0_4 = arith.constant 0 : index
    %6 = vector.load %arg2[%c0_3, %c0_4] : memref<32x2xf32, #tpu.memory_space<vmem>>, vector<32x2xf32>
    %7 = vector.broadcast %5 : vector<32x1xf32> to vector<32x2xf32>
    %8 = arith.mulf %7, %6 : vector<32x2xf32>
    %cst_5 = arith.constant dense<0.000000e+00> : vector<2xf32>
    %9 = vector.multi_reduction <add>, %8, %cst_5 [0] : vector<32x2xf32> to vector<2xf32>
    %10 = vector.shape_cast %9 : vector<2xf32> to vector<1x2xf32>
    %cst_6 = arith.constant 0.000000e+00 : f32
    %11 = vector.broadcast %cst_6 : f32 to vector<1x2xf32>
    %12 = arith.cmpf ogt, %10, %11 : vector<1x2xf32>
    %cst_7 = arith.constant 0.00999999977 : f32
    %13 = vector.broadcast %cst_7 : f32 to vector<1x2xf32>
    %14 = arith.mulf %13, %10 : vector<1x2xf32>
    %15 = arith.select %12, %10, %14 : vector<1x2xi1>, vector<1x2xf32>
    %c0_8 = arith.constant 0 : index
    %c0_9 = arith.constant 0 : index
    %16 = vector.load %arg3[%c0_8, %c0_9] : memref<32x2xf32, #tpu.memory_space<vmem>>, vector<32x2xf32>
    %17 = vector.broadcast %15 : vector<1x2xf32> to vector<32x2xf32>
    %18 = arith.mulf %16, %17 : vector<32x2xf32>
    %cst_10 = arith.constant dense<0.000000e+00> : vector<32xf32>
    %19 = vector.multi_reduction <add>, %18, %cst_10 [1] : vector<32x2xf32> to vector<32xf32>
    %20 = vector.shape_cast %19 : vector<32xf32> to vector<32x1xf32>
    %21 = arith.negf %20 : vector<32x1xf32>
    %22 = math.exp %21 : vector<32x1xf32>
    %cst_11 = arith.constant 1.000000e+00 : f32
    %23 = vector.broadcast %cst_11 : f32 to vector<32x1xf32>
    %24 = arith.addf %23, %22 : vector<32x1xf32>
    %25 = arith.divf %23, %24 : vector<32x1xf32>
    %26 = vector.broadcast %25 : vector<32x1xf32> to vector<32x256xf32>
    %27 = arith.mulf %1, %26 : vector<32x256xf32>
    %c0_12 = arith.constant 0 : index
    %c0_13 = arith.constant 0 : index
    %c0_14 = arith.constant 0 : index
    %28 = vector.load %arg4[%c0_12, %c0_13, %c0_14] : memref<1x32x256xf32, #tpu.memory_space<vmem>>, vector<1x32x256xf32>
    %29 = vector.shape_cast %28 : vector<1x32x256xf32> to vector<32x256xf32>
    %30 = vector.shape_cast %27 : vector<32x256xf32> to vector<1x32x256xf32>
    tpu.vector_store %arg4[%c0_12, %c0_13, %c0_14], %30 {strides = array<i32>} : memref<1x32x256xf32, #tpu.memory_space<vmem>>, vector<1x32x256xf32>,
    return
  }
  func.func @transform_0(%arg0: i32) -> (i32, i32, i32) {
    %c0_i32 = arith.constant 0 : i32
    %c0_i32_0 = arith.constant 0 : i32
    %c0_i32_1 = arith.constant 0 : i32
    return %arg0, %c0_i32, %c0_i32_0 : i32, i32, i32
  }
  func.func @transform_1(%arg0: i32) -> (i32, i32) {
    %c0_i32 = arith.constant 0 : i32
    %c0_i32_0 = arith.constant 0 : i32
    %c0_i32_1 = arith.constant 0 : i32
    return %c0_i32, %c0_i32_0 : i32, i32
  }
  func.func @transform_2(%arg0: i32) -> (i32, i32) {
    %c0_i32 = arith.constant 0 : i32
    %c0_i32_0 = arith.constant 0 : i32
    %c0_i32_1 = arith.constant 0 : i32
    return %c0_i32, %c0_i32_0 : i32, i32
  }
  func.func @transform_3(%arg0: i32) -> (i32, i32, i32) {
    %c0_i32 = arith.constant 0 : i32
    %c0_i32_0 = arith.constant 0 : i32
    %c0_i32_1 = arith.constant 0 : i32
    return %arg0, %c0_i32, %c0_i32_0 : i32, i32, i32
  }
}

</mosaic_0001>

<bundles_post_ra>
// kernel: tpu_custom_call.1
= control target key start
LH: loop header
LB: loop body
LE: loop exit
PB: predicated region body
PF: predicated region fallthrough
CT: control target
= control target key end

     0   :  { %8 = vsyncpa [#allocation3], 0  ;;  %s862_s0 = inlined_call_operand.hbm [shape: f32[2,32,256], index: 0, kind: input, shape index: {}]   ;;  %s863_s1 = inlined_call_operand.vmem [shape: f32[32,2], index: 1, kind: input, shape index: {}]   ;;  %s864_s2 = inlined_call_operand.vmem [shape: f32[32,2], index: 2, kind: input, shape index: {}]   ;;  %s865_s3 = inlined_call_operand.hbm [shape: f32[2,32,256], index: 3, kind: output, shape index: {}]  }
   0x1   :  { %10 = vsyncpa [#allocation3 + $0x1], 0 }
   0x2   :  { %11 = vsyncpa [#allocation4], 0 }
   0x3   :  { %13 = vsyncpa [#allocation4 + $0x1], 0  ;;  %s649_s12 = smov 0   ;;  %s651_s13 = smov 0  }
   0x4   :  { %s653_s14 = smov 0   ;;  %s655_s15 = smov 0  }
   0x5 LB: > { %s670_s16 = sadd.s32 4294967295, %s623_s15   ;;  %s441_s17 = sadd.s32 4294967294, %s623_s15   ;;  %s623_s15 = sphi %s655_s15, %s875_s15   ;;  %s619_s14 = sphi %s653_s14, %s874_s14   ;;  %s615_s13 = sphi %s651_s13, %s873_s13   ;;  %s611_s12 = sphi %s649_s12, %s872_s12  }
   0x6   : > { %s674_s18 = sadd.s32 1, %s623_s15   ;;  %s26_s19 = sadd.s32 1, %s619_s14 }
   0x7   : > { %s23_s20 = ssub.s32 %s623_s15, %s674_s18  ;;  %p33_p0 = scmp.ne.s32.totalorder %s619_s14, %s615_s13 }
   0x8   : > { %p24_p1 = scmp.eq.s32.totalorder %s23_s20, 0  ;;  %p34_p2 = scmp.eq.s32.totalorder %s623_s15, 0 }
   0x9   : > { %p39_p3 = scmp.ne.s32.totalorder %s615_s13, %s611_s12  ;;  %p40_p4 = scmp.eq.s32.totalorder %s670_s16, 0 }
   0xa   : > { %s686_s21 = scalar_select %p24_p1, %s619_s14, %s26_s19  }
   0xb   : > { %p688_p5 = por %p34_p2, %p33_p0  ;;  %p692_p6 = por %p40_p4, %p39_p3 }
   0xc   : > { %p105_p7 = scmp.eq.s32.totalorder %s670_s16, 1  ;;  %p111_p8 = scmp.eq.s32.totalorder %s441_s17, 1 }
   0xd   : > { %p473_p10 = scmp.lt.s32.totalorder %s623_s15, 2  ;;  %s137_s26 = sand.u32 1, %s619_s14  }
   0xe   : > { %p699_p11 = por %p105_p7, %p33_p0  ;;  %p703_p12 = por %p111_p8, %p39_p3 }
   0xf   : > { %s459_s27 = sshll.u32 %s623_s15, 6  ;;  %s444_s28 = sshll.u32 %s137_s26, 6 }
  0x10   : > { %s146_s4 = scalar_lea.hbm %s862_s0, %s459_s27  ;;  %s141_s6 = scalar_lea.vmem [#allocation2], %s444_s28 }
  0x11   : > { %s147_s5 = sshll.u32 %s146_s4, 4  ;;  %s149_s7 = sshll.u32 %s141_s6, 4  ;;  %s148_s5 = int_to_ptr.hbm [resolvable:$true] %s147_s5  ;;  %s150_s7 = int_to_ptr.vmem [resolvable:$true] %s149_s7 }
  0x12   : > { %p714_p13 = pnand %p473_p10, %p688_p5  ;;  %p447_p0 = scmp.ge.s32.totalorder %s623_s15, 1 }
  0x13   : > { %p157_p1 = scmp.lt.s32.totalorder %s623_s15, 3  ;;  %s138_s9 = scalar_lea.sflag [#allocation3], %s137_s26 }
  0x14   : > { %s527_s10 = sshra.s32 %s148_s5, 4  ;;  %p531_p3 = pneg %p714_p13  ;;  %s528_s10 = int_to_ptr.hbm [resolvable:$true] %s527_s10 }
  0x15   : > { %s529_s11 = scalar_lea.hbm %s528_s10, 64  ;;  %s534_s20 = scalar_lea.hbm %s862_s0, 128 }
  0x16   : > { %p530_p2 = scmp.ne.s32.totalorder %s528_s10, %s529_s11  ;;  %p535_p5 = scmp.lt.s32.totalorder %s528_s10, %s862_s0 }
  0x17   : > { %p536_p8 = scmp.lt.s32.totalorder %s534_s20, %s529_s11 }
  0x18   : > { %p532_p4 = pnand %p531_p3, %p530_p2 }
  0x19   : > { %p537_p10 = por %p536_p8, %p535_p5 }
  0x1a   : > { %p533_p7 = pneg %p532_p4 }
  0x1c   : > { %p538_p9 = pnand %p537_p10, %p533_p7 }
  0x1e   : > { %541 = shalt.err (!%p538_p9)
}
  0x1f   : > { %s625_s26 = smov 256   ;;  %s626_s28 = smov 16  }
  0x20   : > { %468 = dma.hbm_to_vmem [thread:$0]  (!%p714_p13), %s148_s5, 1024, %s150_s7, %s138_s9, %s625_s26, %s625_s26, %s626_s28  }
  0x21   : > { %p158_p2 = pnand %p447_p0, %p157_p1 }
  0x22   : > { %s735_s29 = sand.u32 (!%p158_p2), 1, %s615_s13  }
  0x23   : > { %161 = sbr.rel (%p158_p2) target bundleno = 359 (0x167), region = 32  ;;  %s448_s30 = sshll.u32 (!%p158_p2), %s735_s29, 6 }
  0x24   : > { %s164_s4 = scalar_lea.sflag (!%p158_p2), [#allocation3], %s735_s29  ;;  %s167_s6 = scalar_lea.vmem (!%p158_p2), [#allocation2], %s448_s30 }
  0x28   : > { %602 = dma.done.wait (%p692_p6), %s164_s4, 1024  }
  0x29   : > { %604 = vsyncadd (%p692_p6), %s164_s4, 4294966272  ;;  %v745_v0 = vld [vmem:[%s167_s6] sm:$0xff]  ;;  %v747_v1 = vld [vmem:[%s167_s6 + $0x8] sm:$0xff]  ;;  %vm223_vm0 = vcmask 15360   ;;  %s811_s23 = scalar_lea.vmem [#allocation5], %s448_s30  ;;  %s460_s5 = sshll.u32 %s670_s16, 6 }
  0x2a   : > { %v749_v2 = vld [vmem:[%s167_s6 + $0x20] sm:$0xff]  ;;  %v199_v3 = vadd.f32 %v747_v1, %v745_v0  ;;  %v753_v4 = vld [vmem:[%s167_s6 + $0x28] sm:$0xff]  ;;  %v757_v6 = vld [vmem:[%s167_s6 + $0x10] sm:$0xff]  ;;  %s364_s16 = scalar_lea.hbm %s865_s3, %s460_s5  ;;  %s365_s8 = sshll.u32 %s811_s23, 4  ;;  %s366_s8 = int_to_ptr.vmem [resolvable:$true] %s365_s8 }
  0x2b   : > { %v205_v5 = vadd.f32 %v753_v4, %v749_v2  ;;  %v759_v7 = vld [vmem:[%s167_s6 + $0x18] sm:$0xff]  ;;  %v761_v8 = vld [vmem:[%s167_s6 + $0x30] sm:$0xff]  ;;  %v215_v15 = vld [vmem:[%s863_s1] sm:$0xff]  ;;  %s367_s9 = sshll.u32 %s364_s16, 4  ;;  %s353_s10 = scalar_lea.sflag [#allocation4], %s735_s29  ;;  %s368_s9 = int_to_ptr.hbm [resolvable:$true] %s367_s9 }
  0x2c   : > { %200 = vadd.xlane.f32.xlu0 %v199_v3  ;;  %v763_v9 = vld [vmem:[%s167_s6 + $0x38] sm:$0xff]  ;;  %v202_v10 = vadd.f32 %v759_v7, %v757_v6  ;;  %v217_v17 = vld [vmem:[%s863_s1 + $0x10] sm:$0xff]  ;;  %v216_v18 = vld [vmem:[%s863_s1 + $0x8] sm:$0xff]  ;;  %s571_s11 = sshra.s32 %s368_s9, 4  ;;  %s577_s22 = scalar_lea.hbm %s865_s3, 128  ;;  %s572_s11 = int_to_ptr.hbm [resolvable:$true] %s571_s11 }
  0x2d   : > { %206 = vadd.xlane.f32.xlu1 %v205_v5  ;;  %v208_v11 = vadd.f32 %v763_v9, %v761_v8  ;;  %v218_v22 = vld [vmem:[%s863_s1 + $0x18] sm:$0xff]  ;;  %v242_v43 = vld [vmem:[%s864_s2 + $0x10] sm:$0xff]  ;;  %v240_v44 = vld [vmem:[%s864_s2] sm:$0xff]  ;;  %s573_s17 = scalar_lea.hbm %s572_s11, 64  ;;  %p578_p0 = scmp.lt.s32.totalorder %s572_s11, %s865_s3 }
  0x2e   : > { %v243_v42 = vld [vmem:[%s864_s2 + $0x18] sm:$0xff]  ;;  %v241_v52 = vld [vmem:[%s864_s2 + $0x8] sm:$0xff]  ;;  %p574_p6 = scmp.ne.s32.totalorder %s572_s11, %s573_s17  ;;  %p579_p1 = scmp.lt.s32.totalorder %s577_s22, %s573_s17 }
  0x30   : > { %p575_p9 = pnand %p574_p6, %p699_p11  ;;  %p580_p3 = por %p579_p1, %p578_p0 }
  0x32   : > { %p576_p13 = pneg %p575_p9 }
  0x34   : > { %203 = vadd.xlane.f32.xlu0 %v202_v10  ;;  %p581_p4 = pnand %p580_p3, %p576_p13 }
  0x35   : > { %209 = vadd.xlane.f32.xlu1 %v208_v11 }
  0x9f   : > { %v201_v12 = vpop.xlane.xlu0 %200 }
  0xa0   : > { %v207_v13 = vpop.xlane.xlu1 %206  ;;  %v211_v14 = vmul.f32 0.00390625, %v201_v12 }
  0xa1   : > { %v213_v16 = vmul.f32 0.00390625, %v207_v13 }
  0xa2   : > { %v219_v20 = vmul.f32 %v215_v15, %v211_v14 }
  0xa3   : > { %v221_v25 = vmul.f32 %v217_v17, %v213_v16 }
  0xa4   : > { %v224_v28 = vsel %vm223_vm0, %v219_v20, 0.0 }
  0xa5   : > { %v227_v31 = vsel %vm223_vm0, %v221_v25, 0.0 }
  0xa7   : > { %v204_v19 = vpop.xlane.xlu0 %203 }
  0xa8   : > { %v212_v21 = vmul.f32 0.00390625, %v204_v19  ;;  %v210_v23 = vpop.xlane.xlu1 %209 }
  0xa9   : > { %v214_v24 = vmul.f32 0.00390625, %v210_v23 }
  0xaa   : > { %v220_v26 = vmul.f32 %v216_v18, %v212_v21 }
  0xab   : > { %v222_v27 = vmul.f32 %v218_v22, %v214_v24 }
  0xac   : > { %v225_v29 = vsel %vm223_vm0, %v220_v26, 0.0 }
  0xad   : > { %v226_v30 = vadd.f32 %v225_v29, %v224_v28  ;;  %v229_v32 = vsel %vm223_vm0, %v222_v27, 0.0 }
  0xaf   : > { %v228_v33 = vadd.f32 %v227_v31, %v226_v30 }
  0xb1   : > { %v230_v34 = vadd.f32 %v229_v32, %v228_v33 }
  0xb3   : > { %v231_v35 = vrot.slane %v230_v34, 4 }
  0xb5   : > { %v232_v36 = vadd.f32 %v231_v35, %v230_v34 }
  0xb7   : > { %v233_v37 = vrot.slane %v232_v36, 2 }
  0xb9   : > { %v234_v38 = vadd.f32 %v233_v37, %v232_v36 }
  0xbb   : > { %v235_v39 = vrot.slane %v234_v38, 1 }
  0xbd   : > { %v236_v40 = vadd.f32 %v235_v39, %v234_v38 }
  0xbf   : > { %vm237_vm1 = vcmp.gt.f32.partialorder %v236_v40, 0.0  ;;  %v238_v41 = vmul.f32 0.01, %v236_v40 }
  0xc1   : > { %v239_v45 = vsel %vm237_vm1, %v236_v40, %v238_v41 }
  0xc2   : > { %v247_v46 = vmul.f32 %v243_v42, %v239_v45  ;;  %v246_v47 = vmul.f32 %v242_v43, %v239_v45  ;;  %v244_v48 = vmul.f32 %v240_v44, %v239_v45  ;;  %v245_v53 = vmul.f32 %v241_v52, %v239_v45 }
  0xc4   : > { %v257_v49 = vsel %vm223_vm0, %v247_v46, 0.0  ;;  %v254_v50 = vsel %vm223_vm0, %v246_v47, 0.0  ;;  %v248_v51 = vsel %vm223_vm0, %v244_v48, 0.0  ;;  %v251_v54 = vsel %vm223_vm0, %v245_v53, 0.0 }
  0xc5   : > { %258 = vadd.xlane.f32.xlu1 %v257_v49  ;;  %255 = vadd.xlane.f32.xlu0 %v254_v50 }
  0xc6   : > { %249 = vadd.xlane.f32.xlu2 %v248_v51 }
  0xce   : > { %252 = vadd.xlane.f32.xlu2 %v251_v54 }
 0x138   : > { %v259_v55 = vpop.xlane.xlu1 %258  ;;  %v256_v56 = vpop.xlane.xlu0 %255 }
 0x139   : > { %v453_v57 = vmul.f32 -1.442695, %v259_v55  ;;  %v452_v58 = vmul.f32 -1.442695, %v256_v56  ;;  %v250_v59 = vpop.xlane.xlu2 %249 }
 0x13a   : > { %v450_v60 = vmul.f32 -1.442695, %v250_v59 }
 0x13b   : > { %511 = vpow2.f32 %v453_v57 }
 0x13c   : > { %513 = vpow2.f32 %v452_v58 }
 0x13d   : > { %515 = vpow2.f32 %v450_v60 }
 0x141   : > { %v512_v61 = vpop.eup %511  ;;  %v253_v62 = vpop.xlane.xlu2 %252 }
 0x142   : > { %v514_v63 = vpop.eup %513  ;;  %v275_v3 = vadd.f32 1.0, %v512_v61  ;;  %v451_v5 = vmul.f32 -1.442695, %v253_v62 }
 0x143   : > { %v516_v10 = vpop.eup %515  ;;  %v274_v11 = vadd.f32 1.0, %v514_v63 }
 0x144   : > { %517 = vrcp.f32 %v275_v3  ;;  %v272_v12 = vadd.f32 1.0, %v516_v10  ;;  %v330_v19 = vand.u32 2147483647, %v275_v3  ;;  %v332_v22 = vand.u32 2147483648, %v275_v3 }
 0x145   : > { %519 = vrcp.f32 %v274_v11  ;;  %v317_v24 = vand.u32 2147483648, %v274_v11  ;;  %vm326_vm3 = vweird.f32 %v275_v3  ;;  %v315_v28 = vand.u32 2147483647, %v274_v11 }
 0x146   : > { %521 = vpow2.f32 %v451_v5  ;;  %vm331_vm5 = vcmp.eq.f32.partialorder %v330_v19, 8.507059e+37  ;;  %vm311_vm6 = vweird.f32 %v274_v11  ;;  %v333_v31 = vor.u32 1.1754944e-38, %v332_v22 }
 0x147   : > { %523 = vrcp.f32 %v272_v12  ;;  %v318_v33 = vor.u32 1.1754944e-38, %v317_v24  ;;  %v287_v34 = vand.u32 2147483648, %v272_v12  ;;  %v285_v37 = vand.u32 2147483647, %v272_v12 }
 0x148   : > { %vm316_vm10 = vcmp.eq.f32.partialorder %v315_v28, 8.507059e+37  ;;  %vm281_vm11 = vweird.f32 %v272_v12 }
 0x149   : > { %v288_v47 = vor.u32 1.1754944e-38, %v287_v34  ;;  %vm286_vm13 = vcmp.eq.f32.partialorder %v285_v37, 8.507059e+37 }
 0x14a   : > { %v518_v13 = vpop.eup %517 }
 0x14b   : > { %v520_v14 = vpop.eup %519  ;;  %v322_v15 = vmul.f32 %v518_v13, %v275_v3  ;;  %vm327_vm2 = vweird.f32 %v518_v13 }
 0x14c   : > { %v522_v16 = vpop.eup %521  ;;  %v307_v17 = vmul.f32 %v520_v14, %v274_v11  ;;  %vm312_vm4 = vweird.f32 %v520_v14  ;;  %vm328_vm7 = vmor %vm326_vm3, %vm327_vm2 }
 0x14d   : > { %v323_v18 = vsub.f32 1.0, %v322_v15  ;;  %v801_v20 = vadd.f32 1.0, %v522_v16  ;;  %v524_v21 = vpop.eup %523  ;;  %vm313_vm8 = vmor %vm311_vm6, %vm312_vm4 }
 0x14e   : > { %v308_v23 = vsub.f32 1.0, %v307_v17  ;;  %v277_v26 = vmul.f32 %v524_v21, %v272_v12  ;;  %vm282_vm9 = vweird.f32 %v524_v21 }
 0x14f   : > { %v324_v25 = vmul.f32 %v518_v13, %v323_v18  ;;  %525 = vrcp.f32 %v801_v20  ;;  %vm283_vm12 = vmor %vm281_vm11, %vm282_vm9  ;;  %v302_v50 = vand.u32 2147483648, %v801_v20  ;;  %v300_v52 = vand.u32 2147483647, %v801_v20 }
 0x150   : > { %v309_v27 = vmul.f32 %v520_v14, %v308_v23  ;;  %v278_v30 = vsub.f32 1.0, %v277_v26  ;;  %vm296_vm15 = vweird.f32 %v801_v20 }
 0x151   : > { %v325_v29 = vadd.f32 %v518_v13, %v324_v25  ;;  %vm301_vm1 = vcmp.eq.f32.partialorder %v300_v52, 8.507059e+37 }
 0x152   : > { %v310_v32 = vadd.f32 %v520_v14, %v309_v27  ;;  %v279_v36 = vmul.f32 %v524_v21, %v278_v30 }
 0x153   : > { %v329_v35 = vsel %vm328_vm7, %v518_v13, %v325_v29 }
 0x154   : > { %v334_v38 = vsel %vm331_vm5, %v333_v31, %v329_v35  ;;  %v314_v39 = vsel %vm313_vm8, %v520_v14, %v310_v32  ;;  %v280_v44 = vadd.f32 %v524_v21, %v279_v36 }
 0x155   : > { %v526_v40 = vpop.eup %525  ;;  %v342_v41 = vmul.f32 %v334_v38, %v761_v8  ;;  %v343_v42 = vmul.f32 %v334_v38, %v763_v9  ;;  %v319_v43 = vsel %vm316_vm10, %v318_v33, %v314_v39 }
 0x156   : > { %v340_v45 = vmul.f32 %v319_v43, %v749_v2  ;;  %v341_v46 = vmul.f32 %v319_v43, %v753_v4  ;;  %v292_v48 = vmul.f32 %v526_v40, %v801_v20  ;;  %v284_v8 = vsel %vm283_vm12, %v524_v21, %v280_v44 }
 0x157   : > { %350 = vst [vmem:[%s811_s23 + $0x30] sm:$0xff] %v342_v41  ;;  %v289_v2 = vsel %vm286_vm13, %v288_v47, %v284_v8  ;;  %vm297_vm14 = vweird.f32 %v526_v40 }
 0x158   : > { %351 = vst [vmem:[%s811_s23 + $0x38] sm:$0xff] %v343_v42  ;;  %v293_v4 = vsub.f32 1.0, %v292_v48  ;;  %v336_v9 = vmul.f32 %v289_v2, %v745_v0  ;;  %v337_v49 = vmul.f32 %v289_v2, %v747_v1  ;;  %vm298_vm0 = vmor %vm296_vm15, %vm297_vm14  ;;  %v303_v0 = vor.u32 1.1754944e-38, %v302_v50 }
 0x159   : > { %348 = vst [vmem:[%s811_s23 + $0x20] sm:$0xff] %v340_v45 }
 0x15a   : > { %349 = vst [vmem:[%s811_s23 + $0x28] sm:$0xff] %v341_v46  ;;  %v294_v51 = vmul.f32 %v526_v40, %v293_v4 }
 0x15b   : > { %344 = vst [vmem:[%s811_s23] sm:$0xff] %v336_v9 }
 0x15c   : > { %345 = vst [vmem:[%s811_s23 + $0x8] sm:$0xff] %v337_v49  ;;  %v295_v53 = vadd.f32 %v526_v40, %v294_v51 }
 0x15e   : > { %v299_v1 = vsel %vm298_vm0, %v526_v40, %v295_v53 }
 0x15f   : > { %v304_v54 = vsel %vm301_vm1, %v303_v0, %v299_v1 }
 0x160   : > { %v338_v55 = vmul.f32 %v304_v54, %v757_v6  ;;  %v339_v56 = vmul.f32 %v304_v54, %v759_v7 }
 0x162   : > { %346 = vst [vmem:[%s811_s23 + $0x10] sm:$0xff] %v338_v55 }
 0x163   : > { %347 = vst [vmem:[%s811_s23 + $0x18] sm:$0xff] %v339_v56 }
 0x164   : > { %584 = shalt.err (!%p581_p4)
}
 0x165   : > { %s627_s29 = smov 256   ;;  %s628_s28 = smov 16  }
 0x166   : > { %463 = dma.vmem_to_hbm [thread:$0]  (%p699_p11), %s366_s8, 1024, %s368_s9, %s353_s10, %s627_s29, %s627_s29, %s628_s28  }
 0x167 PF: > { %s382_s4 = sand.u32 1, %s611_s12   ;;  %p871_p7 = scmp.ge.s32.totalorder %s623_s15, 2 }
 0x168   : > { %s383_s6 = scalar_lea.sflag [#allocation4], %s382_s4 }
 0x169   : > { %p470_p5 = pnand %p871_p7, %p703_p12 }
 0x16b   : > { %p471_p8 = pneg %p470_p5 }
 0x16d   : > { %606 = dma.done.wait (%p471_p8), %s383_s6, 1024  }
 0x16e   : > { %608 = vsyncadd (%p471_p8), %s383_s6, 4294966272  ;;  %p16_p10 = scmp.ge.s32.totalorder %s674_s18, 4   ;;  %s872_s12 = smov %s615_s13 }
 0x16f   : > { %s873_s13 = smov %s619_s14  ;;  %s874_s14 = smov %s686_s21 }
 0x170   : > { %s875_s15 = smov %s674_s18  ;;  %18 = sbr.rel (!%p16_p10) target bundleno = 5 (0x5), region = 77 }
 0x175   :  { %389 = vsyncpa [#allocation3], 1 }
 0x176   :  { %391 = vsyncpa [#allocation3 + $0x1], 1 }
 0x177   :  { %392 = vsyncpa [#allocation4], 1 }
 0x178   :  { %394 = vsyncpa [#allocation4 + $0x1], 1 }

</bundles_post_ra>
